<compile_context>
chip_gen: v7x
topology: tpu7x:2x2x1
jax: 0.10.0
libtpu: 0.0.40
codegen_flags: <defaults>
</compile_context>

<pallas_src>
import numpy as np
import jax
import jax.numpy as jnp
from jax import lax
from jax.experimental import pallas as pl
from jax.experimental.pallas import tpu as pltpu

POOL_SIZES = (1, 2, 3, 6)
MAX_S = max(POOL_SIZES)           # 6
NBINS = MAX_S * MAX_S             # 36 (common padded bin count for all branches)


# ---------------------------------------------------------------------------
# Host-side construction of the exact pooling / bilinear-resize operators.
# ---------------------------------------------------------------------------
def adaptive_pool_matrix(s, n):
    """(s, n) matrix M s.t. M @ v == AdaptiveAvgPool1d(s)(v) for length-n v."""
    P = np.zeros((s, n), np.float32)
    for i in range(s):
        a = (i * n) // s                       # floor(i*n/s)
        b = -((-(i + 1) * n) // s)             # ceil((i+1)*n/s)
        P[i, a:b] = 1.0 / (b - a)
    return P


def upsample_matrix(s, out_size):
    """(out_size, s) matrix U s.t. U @ v == bilinear resize (align_corners=False)."""
    U = np.zeros((out_size, s), np.float32)
    scale = s / out_size
    for o in range(out_size):
        src = scale * (o + 0.5) - 0.5
        if src < 0.0:
            src = 0.0
        y0 = min(int(np.floor(src)), s - 1)
        frac = src - y0
        y1 = y0 + 1 if y0 < s - 1 else y0
        U[o, y0] += 1.0 - frac
        U[o, y1] += frac
    return U


def build_kron_operators(H, W):
    """Returns (pk, uk), both lane-dense (last dim = H*W):
         pk: (4, 36, H*W)  so that  pooled = x_flat . pk[b]^T   (contract H*W)
         uk: (4, 36, H*W)  so that  up     = act @ uk[b]
       Unused bins (i >= s or j >= s) have zero pool rows / zero upsample rows.
    """
    HW = H * W
    pk = np.zeros((4, NBINS, HW), np.float32)
    uk = np.zeros((4, NBINS, HW), np.float32)
    for b, s in enumerate(POOL_SIZES):
        ph = np.zeros((MAX_S, H), np.float32); ph[:s] = adaptive_pool_matrix(s, H)
        pw = np.zeros((MAX_S, W), np.float32); pw[:s] = adaptive_pool_matrix(s, W)
        uh = np.zeros((H, MAX_S), np.float32); uh[:, :s] = upsample_matrix(s, H)
        uw = np.zeros((W, MAX_S), np.float32); uw[:, :s] = upsample_matrix(s, W)
        P = np.kron(ph, pw)            # (36, H*W)  row = i*6+j, col = y*W+x
        U = np.kron(uh, uw)            # (H*W, 36)  row = Y*W+X, col = i*6+j
        pk[b] = P
        uk[b] = U.T                    # (36, H*W)
    return jnp.asarray(pk), jnp.asarray(uk)


# ---------------------------------------------------------------------------
# Per-generation VMEM budgets and tile selection (aware of H*W and dtype).
# ---------------------------------------------------------------------------
def _vmem_budgets():
    """Returns (tile_budget_bytes, vmem_limit_cap_bytes)."""
    cap = None
    try:
        cap = getattr(pltpu.get_tpu_info(), "vmem_capacity_bytes", None)
    except Exception:
        cap = None
    if cap is not None and cap <= 64 * 2**20:
        # v7x-class: 64 MiB physical VMEM; leave compiler headroom.
        return 36 * 2**20, 52 * 2**20
    # v5e / v6e: 128 MiB physical VMEM.
    return 80 * 2**20, 104 * 2**20


def _divisor_tiles(total):
    """Candidate tile sizes: `total` itself, then multiples of 8 dividing it (desc)."""
    cands = [total]
    for t in range(total - total % 8, 7, -8):
        if t != total and total % t == 0:
            cands.append(t)
    return cands


def _pick_tile(total, per_unit_bytes, fixed_bytes, budget):
    cands = _divisor_tiles(total)
    for t in cands:
        if fixed_bytes + t * per_unit_bytes <= budget:
            return t
    return cands[-1]


# ---------------------------------------------------------------------------
# Kernel 1: adaptive average pooling for all 4 branches.  Reads x exactly once.
# ---------------------------------------------------------------------------
def pool_kernel(x_ref, pk_ref, pooled_ref):
    x = x_ref[0]                                         # (c_tile, H*W) compute dtype
    for b in range(4):                                   # static unroll, 4 MXU calls
        pooled_ref[0, b] = lax.dot_general(
            x, pk_ref[b],                                # (c_tile,HW) . (36,HW)^T
            (((1,), (1,)), ((), ())),
            preferred_element_type=jnp.float32,
        ).astype(pooled_ref.dtype)                       # (c_tile, 36) f32


# ---------------------------------------------------------------------------
# Kernel 2: folded-BN 1x1 conv + bias + ReLU + bilinear upsample, per branch.
# ---------------------------------------------------------------------------
def branch_kernel(pooled_ref, uk_ref, w_ref, b_ref, o_ref):
    w = w_ref[0]                                         # (o_tile, C) compute dtype
    pooled = pooled_ref[0, 0].astype(w.dtype)            # (C, 36)
    conv = jnp.dot(w, pooled, preferred_element_type=jnp.float32)   # (o_tile, 36) f32
    # Folded-BN bias + ReLU in f32.  Padded (zero) bins may turn nonzero here, but
    # the zero rows of the upsample operator annihilate them (exact).
    act = jnp.maximum(conv + b_ref[0], 0.0)              # (o_tile, 36) f32
    uk = uk_ref[0]                                       # (36, H*W)
    up = jnp.dot(act.astype(uk.dtype), uk,
                 preferred_element_type=jnp.float32)     # (o_tile, H*W) f32
    o_ref[0, 0] = up.astype(o_ref.dtype)


# ---------------------------------------------------------------------------
# Wrapper
# ---------------------------------------------------------------------------
def run_pyramid_pooling(x, w_eff, bias_bc, pk_t, uk_t, *, compute_dtype=jnp.float32):
    """x: (N, C, H, W) f32; w_eff: (4, O, C); bias_bc: (4, O, 36) f32 (pre-broadcast);
       pk_t: (4, 36, H*W); uk_t: (4, 36, H*W).  Returns (N, 2*C, H, W) in x.dtype."""
    N, C, H, W = x.shape
    assert C % 4 == 0, "in_channels must be divisible by 4"
    O = C // 4
    HW = H * W
    isz = np.dtype(compute_dtype).itemsize

    xf = x.reshape(N, C, HW).astype(compute_dtype)
    pk = pk_t.astype(compute_dtype)
    uk = uk_t.astype(compute_dtype)
    w = w_eff.astype(compute_dtype)

    tile_budget, vmem_cap = _vmem_budgets()

    # ---------------- kernel 1: pooling (x read once) ----------------
    # Per-channel VMEM (double buffered): x row + pooled row (f32, lane-padded 36->128).
    per_c = 2 * HW * isz + 2 * 4 * 128 * 4
    # Fixed: pool operators (sublane-padded 36->40), double buffered conservatively.
    fixed1 = 2 * 4 * 40 * HW * isz
    c_tile = _pick_tile(C, per_c, fixed1, tile_budget)
    if N == 1 and c_tile == C:
        # Keep >=2 parallel programs for v7x megacore at batch 1.
        cands = _divisor_tiles(C)
        if len(cands) > 1:
            c_tile = cands[1]
    n_ct = C // c_tile
    est1 = fixed1 + c_tile * per_c
    vmem1 = int(min(vmem_cap, max(est1 * 5 // 4, 32 * 2**20)))

    pooled = pl.pallas_call(
        pool_kernel,
        out_shape=jax.ShapeDtypeStruct((N, 4, C, NBINS), jnp.float32),
        grid=(N, n_ct),
        in_specs=[
            pl.BlockSpec((1, c_tile, HW), lambda n, ct: (n, ct, 0)),     # x tile
            pl.BlockSpec((4, NBINS, HW), lambda n, ct: (0, 0, 0)),       # pool ops
        ],
        out_specs=pl.BlockSpec((1, 4, c_tile, NBINS), lambda n, ct: (n, 0, ct, 0)),
        compiler_params=pltpu.CompilerParams(
            dimension_semantics=("parallel", "parallel"),
            vmem_limit_bytes=vmem1),
    )(xf, pk)

    # ------- kernel 2: conv + bias + ReLU + upsample (weights batch-resident) -------
    # Per output-channel VMEM (double buffered): output row + weight row + bias row.
    per_o = 2 * (HW * isz + C * isz + 128 * 4)
    # Fixed: pooled slab (f32, lane-padded) + upsample operator (sublane-padded).
    fixed2 = 2 * (C * 128 * 4 + 40 * HW * isz)
    o_tile = _pick_tile(O, per_o, fixed2, tile_budget)
    n_ot = O // o_tile
    est2 = fixed2 + o_tile * per_o
    vmem2 = int(min(vmem_cap, max(est2 * 5 // 4, 32 * 2**20)))

    branches = pl.pallas_call(
        branch_kernel,
        out_shape=jax.ShapeDtypeStruct((N, 4, O, HW), compute_dtype),
        # N innermost so the weight / operator blocks (index maps independent of n)
        # stay resident in VMEM across the whole batch.
        grid=(4, n_ot, N),
        in_specs=[
            pl.BlockSpec((1, 1, C, NBINS), lambda br, ot, n: (n, br, 0, 0)),  # pooled
            pl.BlockSpec((1, NBINS, HW), lambda br, ot, n: (br, 0, 0)),       # upsample op
            pl.BlockSpec((1, o_tile, C), lambda br, ot, n: (br, ot, 0)),      # conv weight
            pl.BlockSpec((1, o_tile, NBINS), lambda br, ot, n: (br, ot, 0)),  # folded bias
        ],
        out_specs=pl.BlockSpec((1, 1, o_tile, HW), lambda br, ot, n: (n, br, ot, 0)),
        compiler_params=pltpu.CompilerParams(
            dimension_semantics=("parallel", "parallel", "parallel"),
            vmem_limit_bytes=vmem2),
    )(pooled, uk, w, bias_bc)

    branches = branches.reshape(N, 4 * O, H, W).astype(x.dtype)
    # Identity passthrough concatenated outside the kernels.
    return jnp.concatenate([x, branches], axis=1)


# ---------------------------------------------------------------------------
# Pure-JAX reference (unfolded BN, unpadded per-size operators) for correctness.
# ---------------------------------------------------------------------------
def ref_forward(x, conv_w, gamma, beta, run_mean, run_var, eps):
    N, C, H, W = x.shape
    feats = [x]
    for b, s in enumerate(POOL_SIZES):
        Ph = jnp.asarray(adaptive_pool_matrix(s, H))
        Pw = jnp.asarray(adaptive_pool_matrix(s, W))
        Uh = jnp.asarray(upsample_matrix(s, H))
        Uw = jnp.asarray(upsample_matrix(s, W))
        pooled = jnp.einsum('iy,ncyx,jx->ncij', Ph, x, Pw, precision='highest')
        conv = jnp.einsum('oc,ncij->noij', conv_w[b], pooled, precision='highest')
        scale = gamma[b] / jnp.sqrt(run_var[b] + eps)
        bn = ((conv - run_mean[b][None, :, None, None]) * scale[None, :, None, None]
              + beta[b][None, :, None, None])
        act = jnp.maximum(bn, 0.0)
        up = jnp.einsum('Hi,noij,Wj->noHW', Uh, act, Uw, precision='highest')
        feats.append(up)
    return jnp.concatenate(feats, axis=1)


if __name__ == "__main__":
    N, C, H, W = 2, 8, 16, 16            # in_channels=8 -> out_channels per branch = 2
    O = C // 4
    eps = 1e-5

    key = jax.random.PRNGKey(0)
    k = jax.random.split(key, 6)
    x = jax.random.normal(k[0], (N, C, H, W), jnp.float32)

    # Deterministic synthetic parameters (one set per branch):
    conv_w = 0.2 * jax.random.normal(k[1], (4, O, C), jnp.float32)       # 1x1 conv, no bias
    gamma = 1.0 + 0.1 * jax.random.normal(k[2], (4, O), jnp.float32)     # BN weight
    beta = 0.1 * jax.random.normal(k[3], (4, O), jnp.float32)            # BN bias
    run_mean = 0.1 * jax.random.normal(k[4], (4, O), jnp.float32)        # BN running_mean
    run_var = 1.0 + 0.5 * jax.random.uniform(k[5], (4, O), jnp.float32)  # BN running_var

    # Fold inference-mode BatchNorm into the conv weight + a bias.
    scale = gamma / jnp.sqrt(run_var + eps)                              # (4, O)
    w_eff = conv_w * scale[:, :, None]                                   # (4, O, C)
    bias_vec = beta - run_mean * scale                                   # (4, O)
    bias_bc = jnp.tile(bias_vec[:, :, None], (1, 1, NBINS))              # (4, O, 36) f32

    pk_t, uk_t = build_kron_operators(H, W)

    # f32 path (exact check)
    out = run_pyramid_pooling(x, w_eff, bias_bc, pk_t, uk_t)
    out = jax.block_until_ready(out)

    ref = ref_forward(x, conv_w, gamma, beta, run_mean, run_var, eps)
    ref = jax.block_until_ready(ref)

    assert out.shape == (N, 2 * C, H, W), out.shape
    np.testing.assert_allclose(np.asarray(out), np.asarray(ref), rtol=1e-4, atol=1e-4)

    # bf16 compute path (memory-bound speedup, bf16 output writeback) — looser tolerance.
    out_bf16 = run_pyramid_pooling(x, w_eff, bias_bc, pk_t, uk_t,
                                   compute_dtype=jnp.bfloat16)
    out_bf16 = jax.block_until_ready(out_bf16)
    np.testing.assert_allclose(np.asarray(out_bf16), np.asarray(ref), rtol=0.1, atol=0.1)

    print("KERNEL_OK")
</pallas_src>

<mosaic_0001>
module attributes {stable_mosaic.version = 11 : i64} {
  func.func @pool_kernel(%arg0: i32, %arg1: i32, %arg2: memref<1x8x256xf32, #tpu.memory_space<vmem>>, %arg3: memref<4x36x256xf32, #tpu.memory_space<vmem>>, %arg4: memref<1x4x8x36xf32, #tpu.memory_space<vmem>>) attributes {dimension_semantics = [#tpu.dimension_semantics<parallel>, #tpu.dimension_semantics<parallel>], iteration_bounds = array<i64: 2, 1>, scalar_prefetch = 0 : i64, scratch_operands = 0 : i64, tpu.core_type = #tpu.core_type<tc>, window_params = [{transform_indices = @transform_0, window_bounds = array<i64: 1, 8, 256>}, {pipeline_mode = #tpu.pipeline_mode<synchronous>, transform_indices = @transform_1, window_bounds = array<i64: 4, 36, 256>}, {transform_indices = @transform_2, window_bounds = array<i64: 1, 4, 8, 36>}]} {
    %c0 = arith.constant 0 : index
    %c0_0 = arith.constant 0 : index
    %c0_1 = arith.constant 0 : index
    %0 = vector.load %arg2[%c0, %c0_0, %c0_1] : memref<1x8x256xf32, #tpu.memory_space<vmem>>, vector<1x8x256xf32>
    %1 = vector.shape_cast %0 : vector<1x8x256xf32> to vector<8x256xf32>
    %c0_2 = arith.constant 0 : index
    %c0_3 = arith.constant 0 : index
    %c0_4 = arith.constant 0 : index
    %2 = vector.load %arg3[%c0_2, %c0_3, %c0_4] : memref<4x36x256xf32, #tpu.memory_space<vmem>>, vector<1x36x256xf32>
    %3 = vector.shape_cast %2 : vector<1x36x256xf32> to vector<36x256xf32>
    %cst = arith.constant dense<0.000000e+00> : vector<8x36xf32>
    %4 = tpu.matmul %1, %3, %cst {dimension_numbers = #tpu.dot_dimension_numbers<[1], [1], [0], [0], [0, 0, 1, 0], [], []>} : vector<8x256xf32>, vector<36x256xf32>, vector<8x36xf32> -> vector<8x36xf32>
    %c0_5 = arith.constant 0 : index
    %c0_6 = arith.constant 0 : index
    %c0_7 = arith.constant 0 : index
    %c0_8 = arith.constant 0 : index
    %5 = vector.load %arg4[%c0_5, %c0_6, %c0_7, %c0_8] : memref<1x4x8x36xf32, #tpu.memory_space<vmem>>, vector<1x1x8x36xf32>
    %6 = vector.shape_cast %5 : vector<1x1x8x36xf32> to vector<8x36xf32>
    %7 = vector.shape_cast %4 : vector<8x36xf32> to vector<1x1x8x36xf32>
    tpu.vector_store %arg4[%c0_5, %c0_6, %c0_7, %c0_8], %7 {strides = array<i32>} : memref<1x4x8x36xf32, #tpu.memory_space<vmem>>, vector<1x1x8x36xf32>,
    %c1 = arith.constant 1 : index
    %c0_9 = arith.constant 0 : index
    %c0_10 = arith.constant 0 : index
    %8 = vector.load %arg3[%c1, %c0_9, %c0_10] : memref<4x36x256xf32, #tpu.memory_space<vmem>>, vector<1x36x256xf32>
    %9 = vector.shape_cast %8 : vector<1x36x256xf32> to vector<36x256xf32>
    %cst_11 = arith.constant dense<0.000000e+00> : vector<8x36xf32>
    %10 = tpu.matmul %1, %9, %cst_11 {dimension_numbers = #tpu.dot_dimension_numbers<[1], [1], [0], [0], [0, 0, 1, 0], [], []>} : vector<8x256xf32>, vector<36x256xf32>, vector<8x36xf32> -> vector<8x36xf32>
    %c0_12 = arith.constant 0 : index
    %c1_13 = arith.constant 1 : index
    %c0_14 = arith.constant 0 : index
    %c0_15 = arith.constant 0 : index
    %11 = vector.load %arg4[%c0_12, %c1_13, %c0_14, %c0_15] : memref<1x4x8x36xf32, #tpu.memory_space<vmem>>, vector<1x1x8x36xf32>
    %12 = vector.shape_cast %11 : vector<1x1x8x36xf32> to vector<8x36xf32>
    %13 = vector.shape_cast %10 : vector<8x36xf32> to vector<1x1x8x36xf32>
    tpu.vector_store %arg4[%c0_12, %c1_13, %c0_14, %c0_15], %13 {strides = array<i32>} : memref<1x4x8x36xf32, #tpu.memory_space<vmem>>, vector<1x1x8x36xf32>,
    %c2 = arith.constant 2 : index
    %c0_16 = arith.constant 0 : index
    %c0_17 = arith.constant 0 : index
    %14 = vector.load %arg3[%c2, %c0_16, %c0_17] : memref<4x36x256xf32, #tpu.memory_space<vmem>>, vector<1x36x256xf32>
    %15 = vector.shape_cast %14 : vector<1x36x256xf32> to vector<36x256xf32>
    %cst_18 = arith.constant dense<0.000000e+00> : vector<8x36xf32>
    %16 = tpu.matmul %1, %15, %cst_18 {dimension_numbers = #tpu.dot_dimension_numbers<[1], [1], [0], [0], [0, 0, 1, 0], [], []>} : vector<8x256xf32>, vector<36x256xf32>, vector<8x36xf32> -> vector<8x36xf32>
    %c0_19 = arith.constant 0 : index
    %c2_20 = arith.constant 2 : index
    %c0_21 = arith.constant 0 : index
    %c0_22 = arith.constant 0 : index
    %17 = vector.load %arg4[%c0_19, %c2_20, %c0_21, %c0_22] : memref<1x4x8x36xf32, #tpu.memory_space<vmem>>, vector<1x1x8x36xf32>
    %18 = vector.shape_cast %17 : vector<1x1x8x36xf32> to vector<8x36xf32>
    %19 = vector.shape_cast %16 : vector<8x36xf32> to vector<1x1x8x36xf32>
    tpu.vector_store %arg4[%c0_19, %c2_20, %c0_21, %c0_22], %19 {strides = array<i32>} : memref<1x4x8x36xf32, #tpu.memory_space<vmem>>, vector<1x1x8x36xf32>,
    %c3 = arith.constant 3 : index
    %c0_23 = arith.constant 0 : index
    %c0_24 = arith.constant 0 : index
    %20 = vector.load %arg3[%c3, %c0_23, %c0_24] : memref<4x36x256xf32, #tpu.memory_space<vmem>>, vector<1x36x256xf32>
    %21 = vector.shape_cast %20 : vector<1x36x256xf32> to vector<36x256xf32>
    %cst_25 = arith.constant dense<0.000000e+00> : vector<8x36xf32>
    %22 = tpu.matmul %1, %21, %cst_25 {dimension_numbers = #tpu.dot_dimension_numbers<[1], [1], [0], [0], [0, 0, 1, 0], [], []>} : vector<8x256xf32>, vector<36x256xf32>, vector<8x36xf32> -> vector<8x36xf32>
    %c0_26 = arith.constant 0 : index
    %c3_27 = arith.constant 3 : index
    %c0_28 = arith.constant 0 : index
    %c0_29 = arith.constant 0 : index
    %23 = vector.load %arg4[%c0_26, %c3_27, %c0_28, %c0_29] : memref<1x4x8x36xf32, #tpu.memory_space<vmem>>, vector<1x1x8x36xf32>
    %24 = vector.shape_cast %23 : vector<1x1x8x36xf32> to vector<8x36xf32>
    %25 = vector.shape_cast %22 : vector<8x36xf32> to vector<1x1x8x36xf32>
    tpu.vector_store %arg4[%c0_26, %c3_27, %c0_28, %c0_29], %25 {strides = array<i32>} : memref<1x4x8x36xf32, #tpu.memory_space<vmem>>, vector<1x1x8x36xf32>,
    return
  }
  func.func @transform_0(%arg0: i32, %arg1: i32) -> (i32, i32, i32) {
    %c0_i32 = arith.constant 0 : i32
    %c0_i32_0 = arith.constant 0 : i32
    return %arg0, %arg1, %c0_i32 : i32, i32, i32
  }
  func.func @transform_1(%arg0: i32, %arg1: i32) -> (i32, i32, i32) {
    %c0_i32 = arith.constant 0 : i32
    %c0_i32_0 = arith.constant 0 : i32
    %c0_i32_1 = arith.constant 0 : i32
    %c0_i32_2 = arith.constant 0 : i32
    return %c0_i32, %c0_i32_0, %c0_i32_1 : i32, i32, i32
  }
  func.func @transform_2(%arg0: i32, %arg1: i32) -> (i32, i32, i32, i32) {
    %c0_i32 = arith.constant 0 : i32
    %c0_i32_0 = arith.constant 0 : i32
    %c0_i32_1 = arith.constant 0 : i32
    return %arg0, %c0_i32, %arg1, %c0_i32_0 : i32, i32, i32, i32
  }
}

</mosaic_0001>

<bundles_post_ra>
// kernel: tpu_custom_call.1
= control target key start
LH: loop header
LB: loop body
LE: loop exit
PB: predicated region body
PF: predicated region fallthrough
CT: control target
= control target key end

     0   :  { %7 = vsyncpa [#allocation3], 0  ;;  %s1077_s0 = inlined_call_operand.vmem [shape: f32[2,8,256], index: 0, kind: input, shape index: {}]   ;;  %s1078_s1 = inlined_call_operand.vmem [shape: f32[4,36,256], index: 1, kind: input, shape index: {}]   ;;  %s1079_s2 = inlined_call_operand.hbm [shape: f32[2,4,8,36], index: 2, kind: output, shape index: {}]  }
   0x1   :  { %9 = vsyncpa [#allocation3 + $0x1], 0  ;;  %s834_s9 = smov 0   ;;  %s836_s10 = smov 0  }
   0x2   :  { %s838_s11 = smov 0   ;;  %s840_s12 = smov 0  }
   0x3   :  { %s842_s13 = smov 0   ;;  %s844_s14 = smov 0  }
   0x4 LB: > { %s599_s15 = sadd.s32 4294967295, %s814_s14   ;;  %s600_s16 = sadd.s32 4294967294, %s814_s14   ;;  %s814_s14 = sphi %s844_s14, %s15_s14   ;;  %s810_s13 = sphi %s842_s13, %s1086_s13   ;;  %s806_s12 = sphi %s840_s12, %s1085_s12   ;;  %s802_s11 = sphi %s838_s11, %s1084_s11   ;;  %s798_s10 = sphi %s836_s10, %s1083_s10   ;;  %s794_s9 = sphi %s834_s9, %s1082_s9  }
   0x5   : > { %s27_s17 = sadd.s32 1, %s810_s13  ;;  %s85_s18 = sadd.s32 1, %s802_s11 }
   0x6   : > { %p29_p0 = scmp.ge.s32.totalorder %s27_s17, 2  ;;  %p95_p1 = scmp.ne.s32.totalorder %s802_s11, %s798_s10 }
   0x7   : > { %p96_p2 = scmp.eq.s32.totalorder %s599_s15, 1  ;;  %p101_p3 = scmp.ne.s32.totalorder %s798_s10, %s794_s9 }
   0x8   : > { %s1088_s17 = smov (%p29_p0, %s27_s17), 0  ;;  %p102_p5 = scmp.eq.s32.totalorder %s600_s16, 1 }
   0x9   : > { %p874_p4 = por %p96_p2, %p95_p1  ;;  %s80_s20 = ssub.s32 %s810_s13, %s1088_s17 }
   0xa   : > { %p603_p6 = scmp.ge.s32.totalorder %s814_s14, 1  ;;  %p83_p7 = scmp.eq.s32.totalorder %s80_s20, 0 }
   0xb   : > { %p881_p8 = por %p102_p5, %p101_p3  ;;  %p135_p9 = scmp.lt.s32.totalorder %s814_s14, 3 }
   0xc   : > { %s887_s22 = scalar_select %p83_p7, %s802_s11, %s85_s18  }
   0xd   : > { %p136_p10 = pnand %p603_p6, %p135_p9 }
   0xe   : > { %v173_v0 = vld [vmem:[%s1078_s1 + $0x8] sm:$0xff] (!%p136_p10)  ;;  %v175_v1 = vld [vmem:[%s1078_s1 + $0x18] sm:$0xff] (!%p136_p10)  ;;  %p161_p11 = scmp.lt.s32.totalorder (!%p136_p10), %s806_s12, 1  ;;  %v172_v5 = vld [vmem:[%s1078_s1] sm:$0xff] (!%p136_p10)  ;;  %s158_s16 = sand.u32 (!%p136_p10), 1, %s798_s10   ;;  %vm252_vm0 = vcmask (!%p136_p10), 293888  }
   0xf   : > { %139 = sbr.rel (%p136_p10) target bundleno = 286 (0x11e), region = 28  ;;  %v608_v2 = vld [vmem:[%s1078_s1 + $0x58] sm:$0xff] (!%p136_p10)  ;;  %v647_v3 = vpack.c.bf16 (!%p136_p10), %v175_v1, %v173_v0  ;;  %v610_v4 = vld [vmem:[%s1078_s1 + $0x68] sm:$0xff] (!%p136_p10)  ;;  %v174_v6 = vld [vmem:[%s1078_s1 + $0x10] sm:$0xff] (!%p136_p10)  ;;  %s604_s18 = sshll.u32 (!%p136_p10), %s158_s16, 5 }
  0x10   : > { %v655_v7 = vpack.c.bf16 (!%p136_p10), %v610_v4, %v608_v2  ;;  %v649_v8 = vpack.c.bf16 (!%p136_p10), %v174_v6, %v172_v5  ;;  %v607_v9 = vld [vmem:[%s1078_s1 + $0x50] sm:$0xff] (!%p136_p10)  ;;  %v609_v10 = vld [vmem:[%s1078_s1 + $0x60] sm:$0xff] (!%p136_p10)  ;;  %v177_v11 = vld [vmem:[%s1078_s1 + $0x28] sm:$0xff] (!%p136_p10)  ;;  %s160_s20 = scalar_lea.vmem (!%p136_p10), [#allocation2], %s604_s18  ;;  %s646_s24 = sshll.u32 (!%p136_p10), %s806_s12, 9 }
  0x11   : > { %648 = vmatprep.subr.bf16.mxu0 (!%p136_p10), %v647_v3  ;;  %v657_v12 = vpack.c.bf16 (!%p136_p10), %v609_v10, %v607_v9  ;;  %v179_v13 = vld [vmem:[%s1078_s1 + $0x38] sm:$0xff] (!%p136_p10)  ;;  %v614_v15 = vld [vmem:[%s1078_s1 + $0x88] sm:$0xff] (!%p136_p10)  ;;  %v176_v18 = vld [vmem:[%s1078_s1 + $0x20] sm:$0xff] (!%p136_p10)  ;;  %s1027_s26 = scalar_lea.hbm (!%p136_p10), %s1079_s2, %s646_s24  ;;  %s1031_s27 = scalar_lea.sflag (!%p136_p10), [#allocation3], %s158_s16 }
  0x12   : > { %v612_v14 = vld [vmem:[%s1078_s1 + $0x78] sm:$0xff] (!%p136_p10)  ;;  %656 = vmatprep.subr.bf16.mxu1 (!%p136_p10), %v655_v7  ;;  %650 = vmatpush1.bf16.xpose.msra.mxu0 (!%p136_p10), %v649_v8  ;;  %v651_v16 = vpack.c.bf16 (!%p136_p10), %v179_v13, %v177_v11  ;;  %v178_v19 = vld [vmem:[%s1078_s1 + $0x30] sm:$0xff] (!%p136_p10)  ;;  %v613_v21 = vld [vmem:[%s1078_s1 + $0x80] sm:$0xff] (!%p136_p10)  ;;  %s816_s28 = smov (!%p136_p10), [#allocation2]  }
  0x13   : > { %v659_v17 = vpack.c.bf16 (!%p136_p10), %v614_v15, %v612_v14  ;;  %658 = vmatpush1.bf16.xpose.msra.mxu1 (!%p136_p10), %v657_v12  ;;  %v611_v20 = vld [vmem:[%s1078_s1 + $0x70] sm:$0xff] (!%p136_p10)  ;;  %v653_v23 = vpack.c.bf16 (!%p136_p10), %v178_v19, %v176_v18  ;;  %v181_v25 = vld [vmem:[%s1078_s1 + $0x48] sm:$0xf] (!%p136_p10)  ;;  %v616_v26 = vld [vmem:[%s1078_s1 + $0x98] sm:$0xf] (!%p136_p10)  ;;  %s740_s29 = sshll.u32 (!%p136_p10), %s816_s28, 4  ;;  %s741_s29 = int_to_ptr.vmem [resolvable:$false] %s740_s29 }
  0x14   : > { %652 = vmatprep.subr.bf16.mxu0 (!%p136_p10), %v651_v16  ;;  %v661_v24 = vpack.c.bf16 (!%p136_p10), %v613_v21, %v611_v20  ;;  %v619_v27 = vld [vmem:[%s1078_s1 + $0xa8] sm:$0xff] (!%p136_p10)  ;;  %v621_v28 = vld [vmem:[%s1078_s1 + $0xb8] sm:$0xff] (!%p136_p10)  ;;  %v180_v31 = vld [vmem:[%s1078_s1 + $0x40] sm:$0xf] (!%p136_p10) }
  0x15   : > { %660 = vmatprep.subr.bf16.mxu1 (!%p136_p10), %v659_v17  ;;  %v630_v29 = vld [vmem:[%s1078_s1 + $0xf8] sm:$0xff] (!%p136_p10)  ;;  %v632_v30 = vld [vmem:[%s1078_s1 + $0x108] sm:$0xff] (!%p136_p10)  ;;  %v615_v32 = vld [vmem:[%s1078_s1 + $0x90] sm:$0xf] (!%p136_p10)  ;;  %v663_v33 = vpack.c.bf16 (!%p136_p10), %v621_v28, %v619_v27 }
  0x16   : > { %s162_s23 = scalar_select %p161_p11, %s806_s12, 1  ;;  %v618_v34 = vld [vmem:[%s1078_s1 + $0xa0] sm:$0xff]  ;;  %v620_v35 = vld [vmem:[%s1078_s1 + $0xb0] sm:$0xff]  ;;  %v671_v37 = vpack.c.bf16 %v632_v30, %v630_v29  ;;  %v623_v39 = vld [vmem:[%s1078_s1 + $0xc8] sm:$0xff] }
  0x17   : > { %v629_v36 = vld [vmem:[%s1078_s1 + $0xf0] sm:$0xff]  ;;  %v631_v38 = vld [vmem:[%s1078_s1 + $0x100] sm:$0xff]  ;;  %v625_v40 = vld [vmem:[%s1078_s1 + $0xd8] sm:$0xff]  ;;  %v665_v44 = vpack.c.bf16 %v620_v35, %v618_v34 }
  0x18   : > { %s645_s30 = sshll.u32 %s162_s23, 4  ;;  %v634_v41 = vld [vmem:[%s1078_s1 + $0x118] sm:$0xff]  ;;  %v636_v42 = vld [vmem:[%s1078_s1 + $0x128] sm:$0xff]  ;;  %v673_v45 = vpack.c.bf16 %v631_v38, %v629_v36  ;;  %v667_v46 = vpack.c.bf16 %v625_v40, %v623_v39  ;;  %v622_v48 = vld [vmem:[%s1078_s1 + $0xc0] sm:$0xff]  ;;  %s518_s23 = sshll.u32 %s160_s20, 4  ;;  %s1022_s23 = int_to_ptr.vmem [resolvable:$true] %s518_s23 }
  0x19   : > { %s936_s15 = scalar_lea.vmem %s1077_s0, %s645_s30  ;;  %v675_v47 = vpack.c.bf16 %v636_v42, %v634_v41  ;;  %v624_v49 = vld [vmem:[%s1078_s1 + $0xd0] sm:$0xff]  ;;  %v635_v51 = vld [vmem:[%s1078_s1 + $0x120] sm:$0xff]  ;;  %v627_v54 = vld [vmem:[%s1078_s1 + $0xe8] sm:$0xf]  ;;  %s736_s12 = scalar_lea.vmem %s1022_s23, 512 }
  0x1a   : > { %v171_v22 = vld [vmem:[%s936_s15 + $0x8] sm:$0xff]  ;;  %654 = vmatpush1.bf16.xpose.msra.mxu0 %v653_v23  ;;  %v170_v43 = vld [vmem:[%s936_s15] sm:$0xff]  ;;  %v633_v50 = vld [vmem:[%s1078_s1 + $0x110] sm:$0xff]  ;;  %v669_v52 = vpack.c.bf16 %v624_v49, %v622_v48  ;;  %p737_p12 = scmp.ne.s32.totalorder %s1022_s23, %s736_s12  ;;  %s742_s30 = scalar_lea.vmem %s741_s29, 1024 }
  0x1b   : > { %246 = vmatprep.mubr.f32.mxu0 %v171_v22  ;;  %329 = vmatprep.mubr.f32.mxu1 %v171_v22  ;;  %v677_v53 = vpack.c.bf16 %v635_v51, %v633_v50  ;;  %v638_v55 = vld [vmem:[%s1078_s1 + $0x138] sm:$0xf]  ;;  %v626_v56 = vld [vmem:[%s1078_s1 + $0xe0] sm:$0xf]  ;;  %v637_v57 = vld [vmem:[%s1078_s1 + $0x130] sm:$0xf]  ;;  %p743_p1 = scmp.lt.s32.totalorder %s1022_s23, %s741_s29  ;;  %p744_p2 = scmp.lt.s32.totalorder %s742_s30, %s736_s12 }
  0x1c   : > { %662 = vmatpush1.bf16.xpose.msra.mxu1 %v661_v24  ;;  %190 = vmatprep.subr.mxu0 %v181_v25  ;;  %p738_p13 = pnand %p737_p12, %p874_p4 }
  0x1d   : > { %273 = vmatprep.subr.mxu1 %v616_v26  ;;  %p745_p3 = por %p744_p2, %p743_p1 }
  0x1e   : > { %p739_p0 = pneg %p738_p13 }
  0x20   : > { %p746_p5 = pnand %p745_p3, %p739_p0 }
  0x22   : > { %191 = vmatpush1.xpose.msra.mxu0 %v180_v31 }
  0x23   : > { %664 = vmatprep.subr.bf16.mxu0 %v663_v33 }
  0x24   : > { %274 = vmatpush1.xpose.msra.mxu1 %v615_v32 }
  0x25   : > { %672 = vmatprep.subr.bf16.mxu1 %v671_v37  ;;  %247 = vmatmul.mubr.f32.vlgmr.msra.gmra.mrb[0].mxu0 %v170_v43 }
  0x26   : > { %666 = vmatpush1.bf16.xpose.msra.mxu0 %v665_v44  ;;  %412 = vmatprep.mubr.f32.mxu0 %v171_v22 }
  0x27   : > { %330 = vmatmul.mubr.f32.vlgmr.msra.gmra.mrb[0].mxu1 %v170_v43  ;;  %668 = vmatprep.subr.bf16.mxu0 %v667_v46 }
  0x28   : > { %674 = vmatpush1.bf16.xpose.msra.mxu1 %v673_v45  ;;  %495 = vmatprep.mubr.f32.mxu1 %v171_v22 }
  0x29   : > { %676 = vmatprep.subr.bf16.mxu1 %v675_v47 }
  0x2e   : > { %670 = vmatpush1.bf16.xpose.msra.mxu0 %v669_v52 }
  0x2f   : > { %356 = vmatprep.subr.mxu0 %v627_v54 }
  0x30   : > { %678 = vmatpush1.bf16.xpose.msra.mxu1 %v677_v53 }
  0x31   : > { %439 = vmatprep.subr.mxu1 %v638_v55 }
  0x36   : > { %357 = vmatpush1.xpose.msra.mxu0 %v626_v56 }
  0x38   : > { %440 = vmatpush1.xpose.msra.mxu1 %v637_v57 }
  0x39   : > { %413 = vmatmul.mubr.f32.vlgmr.msra.gmra.mrb[2].mxu0 %v170_v43 }
  0x3b   : > { %496 = vmatmul.mubr.f32.vlgmr.msra.gmra.mrb[2].mxu1 %v170_v43 }
  0xf8   : > { %v248_v58 = vpop.f32.mrb[0].mxu0 }
  0xf9   : > { %253 = vst.msk [vmem:[%s160_s20] sm:$0xff] %vm252_vm0, %v248_v58  ;;  %v250_v60 = vpop.f32.mrb[1].mxu0 }
  0xfa   : > { %v331_v59 = vpop.f32.mrb[0].mxu1 }
  0xfb   : > { %617 = vst.msk [vmem:[%s160_s20 + $0x8] sm:$0xff] %vm252_vm0, %v331_v59  ;;  %v333_v61 = vpop.f32.mrb[1].mxu1 }
 0x10c   : > { %v414_v62 = vpop.f32.mrb[2].mxu0 }
 0x10d   : > { %628 = vst.msk [vmem:[%s160_s20 + $0x10] sm:$0xff] %vm252_vm0, %v414_v62  ;;  %v416_v0 = vpop.f32.mrb[3].mxu0 }
 0x10e   : > { %v497_v63 = vpop.f32.mrb[2].mxu1 }
 0x10f   : > { %639 = vst.msk [vmem:[%s160_s20 + $0x18] sm:$0xff] %vm252_vm0, %v497_v63  ;;  %v499_v1 = vpop.f32.mrb[3].mxu1 }
 0x110   : > { %749 = shalt.err (!%p746_p5)
}
 0x111   : > { %s750_s3 = scalar_lea.hbm %s1027_s26, 512  ;;  %s754_s6 = scalar_lea.hbm %s1079_s2, 1024 }
 0x112   : > { %p751_p6 = scmp.ne.s32.totalorder %s1027_s26, %s750_s3  ;;  %p755_p10 = scmp.lt.u32.totalorder %s1027_s26, %s1079_s2 }
 0x113   : > { %p756_p11 = scmp.lt.u32.totalorder %s754_s6, %s750_s3  ;;  %p758_p13 = scmp.lt.u32.totalorder %s750_s3, %s1027_s26 }
 0x114   : > { %p752_p7 = pnand %p751_p6, %p874_p4 }
 0x115   : > { %p757_p12 = por %p756_p11, %p755_p10 }
 0x116   : > { %p753_p9 = pneg %p752_p7 }
 0x117   : > { %p759_p0 = por %p758_p13, %p757_p12 }
 0x119   : > { %p760_p1 = pnand %p759_p0, %p753_p9 }
 0x11b   : > { %763 = shalt.err (!%p760_p1)
}
 0x11c   : > { %s817_s16 = smov 128   ;;  %s818_s18 = smov 8  }
 0x11d   : > { %679 = dma.vmem_to_hbm [thread:$0]  (%p874_p4), %s1022_s23, 512, %s1027_s26, %s1031_s27, %s817_s16, %s817_s16, %s818_s18  }
 0x11e PF: > { %p685_p2 = scmp.ge.s32.totalorder %s814_s14, 2  ;;  %s533_s20 = sand.u32 1, %s794_s9  }
 0x11f   : > { %s534_s24 = scalar_lea.sflag [#allocation3], %s533_s20 }
 0x120   : > { %p682_p3 = pnand %p685_p2, %p881_p8 }
 0x122   : > { %789 = dma.done.wait (!%p682_p3), %s534_s24, 512  }
 0x123   : > { %791 = vsyncadd (!%p682_p3), %s534_s24, 4294966784  ;;  %s15_s14 = sadd.s32 1, %s814_s14   ;;  %s1082_s9 = smov %s798_s10 }
 0x124   : > { %p12_p5 = scmp.ge.s32.totalorder %s15_s14, 4   ;;  %s1083_s10 = smov %s802_s11 }
 0x125   : > { %s1084_s11 = smov %s887_s22  ;;  %s1085_s12 = smov %s810_s13 }
 0x126   : > { %s1086_s13 = smov %s1088_s17  ;;  %14 = sbr.rel (!%p12_p5) target bundleno = 4 (0x4), region = 69 }
 0x12d   :  { %539 = vsyncpa [#allocation3], 1 }
 0x12e   :  { %541 = vsyncpa [#allocation3 + $0x1], 1 }

</bundles_post_ra>
